<compile_context>
chip_gen: v5e
topology: v5e:2x2
jax: 0.10.0
libtpu: 0.0.40
codegen_flags: <defaults>
</compile_context>

<pallas_src>
import jax
import jax.numpy as jnp
from jax.experimental import pallas as pl
from jax.experimental.pallas import tpu as pltpu


_TARGET_BLOCK_ELEMS = 1 << 20          # ~4 MiB of f32 per block
_FASTPATH_ELEMS = 1 << 20              # below this, plain XLA fusion wins
_VMEM_LIMIT_BYTES = 32 * 1024 * 1024   # covers v5e's 16 MiB scoped default
_LANE_CANDIDATES = (1024, 512, 256, 128)


def _affine_kernel(params_ref, x_ref, o_ref):
    """o = (x - shift) * scale, computed in f32, cast back on store."""
    shift = params_ref[0]
    scale = params_ref[1]
    x = x_ref[...].astype(jnp.float32)
    o_ref[...] = ((x - shift) * scale).astype(o_ref.dtype)


def _cdiv(a, b):
    return -(-a // b)


def _round_up(n, m):
    return _cdiv(n, m) * m


def _round_down(n, m):
    return (n // m) * m


def _sublane_multiple(*dtypes):
    """Packed-sublane row multiple: 8 for 32-bit, 16 for bf16, 32 for int8/fp8."""
    mult = 8
    for dt in dtypes:
        bits = jnp.dtype(dt).itemsize * 8
        if bits < 32:
            mult = max(mult, 8 * (32 // bits))
    return mult


def _out_dtype_for(in_dtype):
    # torch promotes integer/bool tensors to float when dividing by a python float.
    if jnp.issubdtype(in_dtype, jnp.floating):
        return in_dtype
    return jnp.float32


def _affine_jnp(x, shift, scale, out_dtype):
    return ((x.astype(jnp.float32) - shift) * scale).astype(out_dtype)


def _pick_block_rows(rows, lanes, sub):
    """Largest block (<= ~_TARGET_BLOCK_ELEMS) with >= 2 (ideally even) blocks."""
    target_rows = max(sub, _round_down(_TARGET_BLOCK_ELEMS // lanes, sub))
    if rows <= target_rows:
        if rows >= 2 * sub:
            # Split so a "parallel" grid axis can shard across v7x's 2 TCs;
            # on 1-TC chips this only costs one extra ~0.35us grid step.
            block_rows = _round_up(_cdiv(rows, 2), sub)
        else:
            block_rows = rows                    # single full-extent block
    else:
        block_rows = target_rows
    num_blocks = _cdiv(rows, block_rows)
    # Nudge towards an even block count (v7x 2-TC sharding) when it is free.
    if num_blocks > 1 and num_blocks % 2 == 1:
        cand_rows = _round_up(_cdiv(rows, num_blocks + 1), sub)
        if 0 < cand_rows <= rows:
            cand_blocks = _cdiv(rows, cand_rows)
            if cand_blocks % 2 == 0:
                block_rows, num_blocks = cand_rows, cand_blocks
    return block_rows, num_blocks


def minmax_normalizer_forward(x, min_val, max_val, eps=1e-8, *, force_pallas=False):
    """Pallas implementation of MinMaxNormalizer.forward."""
    x = jnp.asarray(x)
    shift = float(min_val)
    scale = 1.0 / (float(max_val) - float(min_val) + float(eps))
    orig_shape = x.shape
    out_dtype = _out_dtype_for(x.dtype)
    total = int(x.size)

    if total == 0:
        return x.astype(out_dtype)

    # Tiny inputs: pallas_call launch/pipeline overhead dwarfs the work.
    if not force_pallas and total < _FASTPATH_ELEMS:
        return _affine_jnp(x, shift, scale, out_dtype)

    # Lane-dense 2-D view: widest lane width (multiple of 128) dividing total.
    lanes = None
    for cand in _LANE_CANDIDATES:
        if total % cand == 0:
            lanes = cand
            break
    if lanes is None:
        # TODO(synk): element counts not divisible by 128 fall back to fused XLA
        # elementwise (still single-pass HBM traffic); a Pallas path here would
        # need either a near-full prefix copy or 1-D masked blocks.
        return _affine_jnp(x, shift, scale, out_dtype)

    rows = total // lanes
    sub = _sublane_multiple(x.dtype, out_dtype)
    block_rows, num_blocks = _pick_block_rows(rows, lanes, sub)

    x2d = x.reshape(rows, lanes)                 # contiguous reshape: no copy
    params = jnp.asarray([shift, scale], dtype=jnp.float32)

    out2d = pl.pallas_call(
        _affine_kernel,
        out_shape=jax.ShapeDtypeStruct((rows, lanes), out_dtype),
        grid=(num_blocks,),
        in_specs=[
            pl.BlockSpec(memory_space=pltpu.MemorySpace.SMEM),   # [shift, scale]
            pl.BlockSpec((block_rows, lanes), lambda i: (i, 0)),
        ],
        out_specs=pl.BlockSpec((block_rows, lanes), lambda i: (i, 0)),
        compiler_params=pltpu.CompilerParams(
            dimension_semantics=("parallel",),
            vmem_limit_bytes=_VMEM_LIMIT_BYTES,
        ),
    )(params, x2d)

    return out2d.reshape(orig_shape)


class MinMaxNormalizer:
    """JAX/Pallas port of the PyTorch MinMaxNormalizer module."""

    def __init__(self, min_val=None, max_val=None, eps=1e-8):
        self.min_val = min_val
        self.max_val = max_val
        self.eps = eps
        self.fitted = min_val is not None and max_val is not None

    def fit(self, x):
        # TODO(synk): fit() is a one-off host-side scalar extraction (matches
        # torch's x.min().item() / x.max().item()); plain jnp, no kernel.
        x = jnp.asarray(x)
        self.min_val = float(x.min())
        self.max_val = float(x.max())
        self.fitted = True
        return self

    def forward(self, x, *, force_pallas=False):
        if not self.fitted:
            raise RuntimeError("Normalizer not fitted. Call fit() first.")
        return minmax_normalizer_forward(
            x, self.min_val, self.max_val, self.eps, force_pallas=force_pallas
        )

    __call__ = forward

    def inverse(self, x):
        if not self.fitted:
            raise RuntimeError("Normalizer not fitted. Call fit() first.")
        return x * (self.max_val - self.min_val + self.eps) + self.min_val


if __name__ == "__main__":
    key = jax.random.PRNGKey(0)
    k1, k2, k3, k4 = jax.random.split(key, 4)
    eps = 1e-8

    # 1) Small NCHW input (2, 4, 16, 16) with a pre-fitted normalizer; force
    #    the Pallas path so the kernel itself is exercised at this shape.
    min_val, max_val = -5.0, 10.0
    x1 = jax.random.uniform(k1, (2, 4, 16, 16), dtype=jnp.float32,
                            minval=min_val, maxval=max_val)
    norm1 = MinMaxNormalizer(min_val=min_val, max_val=max_val, eps=eps)
    y1 = jax.block_until_ready(norm1.forward(x1, force_pallas=True))
    ref1 = (x1 - min_val) / (max_val - min_val + eps)
    assert y1.shape == x1.shape and y1.dtype == x1.dtype
    assert jnp.allclose(y1, ref1, atol=1e-6, rtol=1e-5)

    # 2) Row count not divisible by block_rows -> exercises the masked partial
    #    last block (no prefix slice / concat); normalizer fitted from data.
    x2 = jax.random.normal(k2, (10, 3, 8, 128), dtype=jnp.float32) * 3.0 + 1.0
    norm2 = MinMaxNormalizer(eps=eps).fit(x2)
    y2 = jax.block_until_ready(norm2.forward(x2, force_pallas=True))
    ref2 = (x2 - norm2.min_val) / (norm2.max_val - norm2.min_val + eps)
    assert y2.shape == x2.shape and y2.dtype == x2.dtype
    assert jnp.allclose(y2, ref2, atol=1e-6, rtol=1e-5)

    # 3) bf16 input -> exercises the 16-row packed-sublane block rounding.
    x3 = jax.random.uniform(k3, (4, 8, 32, 128), dtype=jnp.float32,
                            minval=0.0, maxval=4.0).astype(jnp.bfloat16)
    norm3 = MinMaxNormalizer(min_val=0.0, max_val=4.0, eps=eps)
    y3 = jax.block_until_ready(norm3.forward(x3, force_pallas=True))
    ref3 = ((x3.astype(jnp.float32) - 0.0) / (4.0 - 0.0 + eps)).astype(jnp.bfloat16)
    assert y3.shape == x3.shape and y3.dtype == x3.dtype
    assert jnp.allclose(y3.astype(jnp.float32), ref3.astype(jnp.float32),
                        atol=2e-2, rtol=2e-2)

    # 4) Above the fast-path threshold: takes the Pallas path naturally with a
    #    multi-block parallel grid and a masked final block.
    x4 = jax.random.normal(k4, (4, 8, 128, 288), dtype=jnp.float32)
    norm4 = MinMaxNormalizer(eps=eps).fit(x4)
    y4 = jax.block_until_ready(norm4(x4))
    ref4 = (x4 - norm4.min_val) / (norm4.max_val - norm4.min_val + eps)
    assert y4.shape == x4.shape and y4.dtype == x4.dtype
    assert jnp.allclose(y4, ref4, atol=1e-6, rtol=1e-5)

    print("KERNEL_OK")
</pallas_src>

<mosaic_0001>
module attributes {stable_mosaic.version = 11 : i64} {
  func.func @_affine_kernel(%arg0: i32, %arg1: memref<2xf32, #tpu.memory_space<smem>>, %arg2: memref<2x1024xf32, #tpu.memory_space<vmem>>, %arg3: memref<2x1024xf32, #tpu.memory_space<vmem>>) attributes {dimension_semantics = [#tpu.dimension_semantics<parallel>], iteration_bounds = array<i64: 1>, scalar_prefetch = 0 : i64, scratch_operands = 0 : i64, tpu.core_type = #tpu.core_type<tc>, window_params = [{transform_indices = @transform_0, window_bounds = array<i64: 2>}, {transform_indices = @transform_1, window_bounds = array<i64: 2, 1024>}, {transform_indices = @transform_2, window_bounds = array<i64: 2, 1024>}]} {
    %c0 = arith.constant 0 : index
    %0 = memref.load %arg1[%c0] : memref<2xf32, #tpu.memory_space<smem>>
    %c1 = arith.constant 1 : index
    %1 = memref.load %arg1[%c1] : memref<2xf32, #tpu.memory_space<smem>>
    %c0_0 = arith.constant 0 : index
    %c0_1 = arith.constant 0 : index
    %2 = vector.load %arg2[%c0_0, %c0_1] : memref<2x1024xf32, #tpu.memory_space<vmem>>, vector<2x1024xf32>
    %3 = vector.broadcast %0 : f32 to vector<2x1024xf32>
    %4 = arith.subf %2, %3 : vector<2x1024xf32>
    %5 = vector.broadcast %1 : f32 to vector<2x1024xf32>
    %6 = arith.mulf %4, %5 : vector<2x1024xf32>
    %c0_2 = arith.constant 0 : index
    %c0_3 = arith.constant 0 : index
    %7 = vector.load %arg3[%c0_2, %c0_3] : memref<2x1024xf32, #tpu.memory_space<vmem>>, vector<2x1024xf32>
    tpu.vector_store %arg3[%c0_2, %c0_3], %6 {strides = array<i32>} : memref<2x1024xf32, #tpu.memory_space<vmem>>, vector<2x1024xf32>,
    return
  }
  func.func @transform_0(%arg0: i32) -> i32 {
    %c0_i32 = arith.constant 0 : i32
    %c0_i32_0 = arith.constant 0 : i32
    return %c0_i32 : i32
  }
  func.func @transform_1(%arg0: i32) -> (i32, i32) {
    %c0_i32 = arith.constant 0 : i32
    %c0_i32_0 = arith.constant 0 : i32
    return %arg0, %c0_i32 : i32, i32
  }
  func.func @transform_2(%arg0: i32) -> (i32, i32) {
    %c0_i32 = arith.constant 0 : i32
    %c0_i32_0 = arith.constant 0 : i32
    return %arg0, %c0_i32 : i32, i32
  }
}

</mosaic_0001>

<bundles_post_ra>
// kernel: tpu_custom_call.1
= control target key start
LH: loop header
LB: loop body
LE: loop exit
PB: predicated region body
PF: predicated region fallthrough
CT: control target
= control target key end

     0   :  { %7 = vsyncpa [#allocation5], 0  ;;  %s166_s0 = inlined_call_operand.hbm [shape: f32[2], index: 0, kind: input, shape index: {}]   ;;  %s167_s1 = inlined_call_operand.hbm [shape: f32[2,1024], index: 1, kind: input, shape index: {}]   ;;  %s168_s2 = inlined_call_operand.hbm [shape: f32[2,1024], index: 2, kind: output, shape index: {}]  }
   0x1   :  { %8 = vsyncpa [#allocation3], 0 }
   0x2   :  { %9 = vsyncpa [#allocation4], 0  ;;  %s15_s11 = sshll.u32 %s166_s0, 4  ;;  %s24_s14 = sshll.u32 %s167_s1, 4  ;;  %s16_s11 = int_to_ptr.hbm [resolvable:$true] %s15_s11  ;;  %s25_s14 = int_to_ptr.hbm [resolvable:$true] %s24_s14 }
   0x3   :  { %s139_s15 = smov [#allocation2]   ;;  %s140_s16 = smov [#allocation6]  }
   0x4   :  { %18 = dma.hbm_to_smem %s16_s11, 16, %s139_s15, [#allocation5]  }
   0x5   :  { %s26_s17 = sshll.u32 %s140_s16, 4  ;;  %s27_s17 = int_to_ptr.vmem [resolvable:$true] %s26_s17 }
   0x6   :  { %29 = dma.hbm_to_vmem [thread:$0]  %s25_s14, 256, %s27_s17, [#allocation3]  }
   0x7   :  { %133 = dma.done.wait [#allocation5], 16  }
   0x8   :  { %134 = vsyncadd [#allocation5], 4294967280 }
   0x9   :  { %135 = dma.done.wait [#allocation3], 256  }
   0xa   :  { %136 = vsyncadd [#allocation3], 4294967040 }
   0xb   :  { %38 = sfence }
   0xc   :  { %s39_s18 = sld [smem:[#allocation2]]  ;;  %v41_v0 = vld [vmem:[#allocation6] sm:$0xff]  ;;  %v42_v1 = vld [vmem:[#allocation6 + $0x8] sm:$0xff]  ;;  %s141_s0 = smov [#allocation7]  }
   0xd   :  { %s69_s19 = sld [smem:[#allocation2 + $0x1]]  ;;  %s56_s1 = sshll.u32 %s141_s0, 4  ;;  %s57_s1 = int_to_ptr.vmem [resolvable:$true] %s56_s1 }
   0xe   :  { %s58_s22 = sshll.u32 %s168_s2, 4  ;;  %s59_s22 = int_to_ptr.hbm [resolvable:$true] %s58_s22 }
  0x12   :  { %v43_v2 = vstv %s39_s18 }
  0x13   :  { %v44_v3 = vsub.f32 %v41_v0, %v43_v2  ;;  %v46_v4 = vstv %s69_s19  ;;  %v45_v5 = vsub.f32 %v42_v1, %v43_v2 }
  0x15   :  { %v47_v6 = vmul.f32 %v46_v4, %v44_v3  ;;  %v48_v7 = vmul.f32 %v46_v4, %v45_v5 }
  0x17   :  { %49 = vst [vmem:[#allocation7] sm:$0xff] %v47_v6 }
  0x18   :  { %50 = vst [vmem:[#allocation7 + $0x8] sm:$0xff] %v48_v7 }
  0x19   :  { %61 = dma.vmem_to_hbm [thread:$0]  %s57_s1, 256, %s59_s22, [#allocation4]  }
  0x1a   :  { %137 = dma.done.wait [#allocation4], 256  }
  0x1b   :  { %138 = vsyncadd [#allocation4], 4294967040 }
  0x1c   :  { %66 = vsyncpa [#allocation3], 1 }
  0x1d   :  { %67 = vsyncpa [#allocation4], 1 }
  0x1e   :  { %68 = vsyncpa [#allocation5], 1 }

</bundles_post_ra>
